<compile_context>
chip_gen: v6e
topology: v6e:2x2x1
jax: 0.10.0
libtpu: 0.0.40
codegen_flags: <defaults>
</compile_context>

<pallas_src>
import jax
import jax.numpy as jnp
from jax.experimental import pallas as pl
from jax.experimental.pallas import tpu as pltpu


def _round_up(n, m):
    return ((n + m - 1) // m) * m


# --------------------------------------------------------------------------
# Kernel body
# --------------------------------------------------------------------------
def _residual_mlp_kernel(x_ref, w1_ref, b1_ref, w2_ref, b2_ref, o_ref):
    # x_ref : (TM, C_pad) x.dtype   w1_ref : (C_pad, H_pad) bf16
    # b1_ref: (1, H_pad)  f32       w2_ref : (H_pad, C_pad) bf16
    # b2_ref: (1, C_pad)  f32       o_ref  : (TM, C_pad)    x.dtype
    #
    # Matmul 1: bf16 operands, f32 accumulation (MXU-native).  x_ref is read
    # and cast transiently — the f32 tile is NOT held live across the matmuls.
    h = jnp.dot(x_ref[...].astype(jnp.bfloat16), w1_ref[...],
                preferred_element_type=jnp.float32)
    h = jnp.maximum(h + b1_ref[...], 0.0)            # bias + ReLU in f32 (VPU)
    # Matmul 2: bf16 operands, f32 accumulation.
    y = jnp.dot(h.astype(jnp.bfloat16), w2_ref[...],
                preferred_element_type=jnp.float32)
    y = y + b2_ref[...]                              # bias in f32
    # Fused residual add: re-read the input tile from VMEM (cheap) and store
    # in the output's native dtype.
    o_ref[...] = (x_ref[...].astype(jnp.float32) + y).astype(o_ref.dtype)


# --------------------------------------------------------------------------
# One-time parameter preparation (hoisted out of the per-call path)
# --------------------------------------------------------------------------
def prepare_residual_mlp_params(w1, b1, w2, b2):
    """Pad weights to lane-dense (multiple-of-128) shapes and cast to bf16.

    Call ONCE at model init; the returned dict is reused by every forward.
    Zero-padding is exact: padded hidden/output columns stay exactly 0.
    """
    C, H = w1.shape
    C_pad = _round_up(C, 128)
    H_pad = _round_up(H, 128)
    w1_p = jnp.pad(w1.astype(jnp.float32),
                   ((0, C_pad - C), (0, H_pad - H))).astype(jnp.bfloat16)
    w2_p = jnp.pad(w2.astype(jnp.float32),
                   ((0, H_pad - H), (0, C_pad - C))).astype(jnp.bfloat16)
    b1_p = jnp.pad(b1.astype(jnp.float32), (0, H_pad - H)).reshape(1, H_pad)
    b2_p = jnp.pad(b2.astype(jnp.float32), (0, C_pad - C)).reshape(1, C_pad)
    return {"w1": w1_p, "b1": b1_p, "w2": w2_p, "b2": b2_p,
            "C": C, "H": H, "C_pad": C_pad, "H_pad": H_pad}


# --------------------------------------------------------------------------
# Tiling / VMEM helpers
# --------------------------------------------------------------------------
def _choose_row_tile(M, row_tile):
    """Row tile: multiple of 8 (sublane); >=256 tiles aligned to the 256-wide
    MXU LHS pass; capped so the grid has >=2 blocks when M allows (lets the
    'parallel' axis shard across v7x's two TensorCores)."""
    if M <= 8:
        return 8
    tm = min(row_tile, _round_up(M, 8))
    if M > 256 and _round_up(M, tm) // tm < 2:
        half = _round_up((M + 1) // 2, 8)
        tm = min(tm, half)
    if tm >= 256:
        tm = (tm // 256) * 256
    return tm


def _vmem_ceiling_bytes():
    # ~75% of physical VMEM: ≈96 MiB on 128-MiB parts (v5e/v6e), ≈48 MiB on
    # v7x (64 MiB).  Falls back to a conservative 48 MiB if the query fails.
    try:
        cap = int(pltpu.get_tpu_info().vmem_capacity_bytes)
    except Exception:
        cap = 64 * 1024 * 1024
    return max(min(int(0.75 * cap), 96 * 1024 * 1024), 16 * 1024 * 1024)


def _build_specs(tm, C_pad, H_pad, single_buffer_weights):
    # W1/b1/W2/b2 have constant index_maps (resident in VMEM); single-buffer
    # them when supported (double-buffering a constant operand buys nothing).
    wkw = {"pipeline_mode": pl.Buffered(1)} if single_buffer_weights else {}
    in_specs = [
        pl.BlockSpec((tm, C_pad), lambda i: (i, 0)),            # x rows
        pl.BlockSpec((C_pad, H_pad), lambda i: (0, 0), **wkw),  # W1 (resident)
        pl.BlockSpec((1, H_pad), lambda i: (0, 0), **wkw),      # b1
        pl.BlockSpec((H_pad, C_pad), lambda i: (0, 0), **wkw),  # W2 (resident)
        pl.BlockSpec((1, C_pad), lambda i: (0, 0), **wkw),      # b2
    ]
    out_specs = pl.BlockSpec((tm, C_pad), lambda i: (i, 0))
    return in_specs, out_specs


# --------------------------------------------------------------------------
# Forward
# --------------------------------------------------------------------------
def residual_forward(x, params, *, row_tile=512):
    """x: (B, N, C).  Returns x + m(x), same shape and dtype as x."""
    B, N, C = x.shape
    assert params["C"] == C, "parameter / input channel mismatch"
    w1_p, b1_p, w2_p, b2_p = params["w1"], params["b1"], params["w2"], params["b2"]
    C_pad, H_pad = params["C_pad"], params["H_pad"]
    M = B * N

    tm = _choose_row_tile(M, row_tile)
    M_pad = _round_up(M, tm)
    grid = (M_pad // tm,)

    x2 = x.reshape(M, C)
    need_pad = (M_pad != M) or (C_pad != C)
    if need_pad:
        # Native dtype padding; padded rows are sliced off, padded columns
        # stay exactly 0 through both matmuls.
        x2 = jnp.pad(x2, ((0, M_pad - M), (0, C_pad - C)))

    x_item = jnp.dtype(x.dtype).itemsize

    # VMEM budget (single-buffered weights; x/out tiles double buffered),
    # with 2x headroom, ceilinged by the chip's physical VMEM.
    vmem_need = (
        2 * 2 * tm * C_pad * x_item          # x + out tiles, double buffered
        + 2 * C_pad * H_pad * 2              # W1 + W2 (bf16, resident)
        + 2 * (H_pad + C_pad) * 4            # biases (padded tiles)
        + tm * H_pad * (4 + 2)               # hidden f32 + bf16 copy
        + tm * C_pad * 4                     # f32 result before downcast
    )
    vmem_limit = int(min(max(2 * vmem_need, 8 * 1024 * 1024),
                         _vmem_ceiling_bytes()))

    flops = 4 * M_pad * C_pad * H_pad                       # two matmuls
    bytes_accessed = (2 * M_pad * C_pad * x_item            # x in + out
                      + 2 * C_pad * H_pad * 2               # bf16 weights
                      + (H_pad + C_pad) * 4)                # biases

    def _call(single_buffer_weights):
        in_specs, out_specs = _build_specs(tm, C_pad, H_pad,
                                           single_buffer_weights)
        return pl.pallas_call(
            _residual_mlp_kernel,
            out_shape=jax.ShapeDtypeStruct((M_pad, C_pad), x.dtype),
            grid_spec=pl.GridSpec(grid=grid, in_specs=in_specs,
                                  out_specs=out_specs),
            # Only alias the padded temp (never the caller's x buffer).
            input_output_aliases=({0: 0} if need_pad else {}),
            cost_estimate=pl.CostEstimate(flops=flops, transcendentals=0,
                                          bytes_accessed=bytes_accessed),
            compiler_params=pltpu.CompilerParams(
                dimension_semantics=("parallel",),
                vmem_limit_bytes=vmem_limit),
        )(x2, w1_p, b1_p, w2_p, b2_p)

    try:
        out2 = _call(single_buffer_weights=True)
    except Exception:
        # Fallback if this JAX build rejects pipeline_mode=pl.Buffered(1).
        out2 = _call(single_buffer_weights=False)

    if need_pad:
        out2 = out2[:M, :C]
    return out2.reshape(B, N, C)


# --------------------------------------------------------------------------
# References
# --------------------------------------------------------------------------
def residual_reference_f32(x, w1, b1, w2, b2):
    h = jnp.maximum(x @ w1 + b1, 0.0)
    return x + (h @ w2 + b2)


def residual_reference_bf16(x, w1, b1, w2, b2):
    # Mirrors the kernel's mixed-precision path (bf16 matmuls, f32 accum).
    h = jnp.dot(x.astype(jnp.bfloat16), w1.astype(jnp.bfloat16),
                preferred_element_type=jnp.float32) + b1
    h = jnp.maximum(h, 0.0)
    y = jnp.dot(h.astype(jnp.bfloat16), w2.astype(jnp.bfloat16),
                preferred_element_type=jnp.float32) + b2
    return x + y


if __name__ == "__main__":
    key = jax.random.PRNGKey(0)
    k_x, k_w1, k_b1, k_w2, k_b2 = jax.random.split(key, 5)

    B, N, C, HID = 2, 16, 32, 64   # small (B, N, C) token shapes

    x = jax.random.normal(k_x, (B, N, C), dtype=jnp.float32)
    w1 = jax.random.normal(k_w1, (C, HID), dtype=jnp.float32) * 0.05
    b1 = jax.random.normal(k_b1, (HID,), dtype=jnp.float32) * 0.05
    w2 = jax.random.normal(k_w2, (HID, C), dtype=jnp.float32) * 0.05
    b2 = jax.random.normal(k_b2, (C,), dtype=jnp.float32) * 0.05

    # Weight prep happens ONCE (model init), not per forward call.
    params = prepare_residual_mlp_params(w1, b1, w2, b2)

    out = residual_forward(x, params)
    out = jax.block_until_ready(out)

    assert out.shape == x.shape and out.dtype == x.dtype

    # Tight check against a reference using the same mixed precision.
    ref_mp = residual_reference_bf16(x, w1, b1, w2, b2)
    assert jnp.allclose(out, ref_mp, atol=1e-4, rtol=1e-4), \
        "mismatch vs mixed-precision reference"

    # Sanity check against the pure f32 reference (bf16 matmul tolerance).
    ref_f32 = residual_reference_f32(x, w1, b1, w2, b2)
    assert jnp.allclose(out, ref_f32, atol=3e-2, rtol=3e-2), \
        "mismatch vs f32 reference"

    print("KERNEL_OK")
</pallas_src>

<mosaic_0001>
module attributes {stable_mosaic.version = 11 : i64} {
  func.func @_residual_mlp_kernel(%arg0: i32, %arg1: memref<32x128xf32, #tpu.memory_space<vmem>>, %arg2: memref<128x128xbf16, #tpu.memory_space<vmem>>, %arg3: memref<1x128xf32, #tpu.memory_space<vmem>>, %arg4: memref<128x128xbf16, #tpu.memory_space<vmem>>, %arg5: memref<1x128xf32, #tpu.memory_space<vmem>>, %arg6: memref<32x128xf32, #tpu.memory_space<vmem>>) attributes {dimension_semantics = [#tpu.dimension_semantics<parallel>], iteration_bounds = array<i64: 1>, scalar_prefetch = 0 : i64, scratch_operands = 0 : i64, tpu.core_type = #tpu.core_type<tc>, window_params = [{transform_indices = @transform_0, window_bounds = array<i64: 32, 128>}, {pipeline_mode = #tpu.pipeline_mode<synchronous>, transform_indices = @transform_1, window_bounds = array<i64: 128, 128>}, {pipeline_mode = #tpu.pipeline_mode<synchronous>, transform_indices = @transform_2, window_bounds = array<i64: 1, 128>}, {pipeline_mode = #tpu.pipeline_mode<synchronous>, transform_indices = @transform_3, window_bounds = array<i64: 128, 128>}, {pipeline_mode = #tpu.pipeline_mode<synchronous>, transform_indices = @transform_4, window_bounds = array<i64: 1, 128>}, {transform_indices = @transform_5, window_bounds = array<i64: 32, 128>}]} {
    %c0 = arith.constant 0 : index
    %c0_0 = arith.constant 0 : index
    %0 = vector.load %arg1[%c0, %c0_0] : memref<32x128xf32, #tpu.memory_space<vmem>>, vector<32x128xf32>
    %1 = arith.truncf %0 : vector<32x128xf32> to vector<32x128xbf16>
    %c0_1 = arith.constant 0 : index
    %c0_2 = arith.constant 0 : index
    %2 = vector.load %arg2[%c0_1, %c0_2] : memref<128x128xbf16, #tpu.memory_space<vmem>>, vector<128x128xbf16>
    %cst = arith.constant dense<0.000000e+00> : vector<32x128xf32>
    %3 = tpu.matmul %1, %2, %cst {dimension_numbers = #tpu.dot_dimension_numbers<[1], [0], [0], [1], [0, 0, 1, 1], [], []>} : vector<32x128xbf16>, vector<128x128xbf16>, vector<32x128xf32> -> vector<32x128xf32>
    %c0_3 = arith.constant 0 : index
    %c0_4 = arith.constant 0 : index
    %4 = vector.load %arg3[%c0_3, %c0_4] : memref<1x128xf32, #tpu.memory_space<vmem>>, vector<1x128xf32>
    %5 = vector.broadcast %4 : vector<1x128xf32> to vector<32x128xf32>
    %6 = arith.addf %3, %5 : vector<32x128xf32>
    %cst_5 = arith.constant 0.000000e+00 : f32
    %7 = vector.broadcast %cst_5 : f32 to vector<32x128xf32>
    %8 = arith.maximumf %6, %7 : vector<32x128xf32>
    %9 = arith.truncf %8 : vector<32x128xf32> to vector<32x128xbf16>
    %c0_6 = arith.constant 0 : index
    %c0_7 = arith.constant 0 : index
    %10 = vector.load %arg4[%c0_6, %c0_7] : memref<128x128xbf16, #tpu.memory_space<vmem>>, vector<128x128xbf16>
    %cst_8 = arith.constant dense<0.000000e+00> : vector<32x128xf32>
    %11 = tpu.matmul %9, %10, %cst_8 {dimension_numbers = #tpu.dot_dimension_numbers<[1], [0], [0], [1], [0, 0, 1, 1], [], []>} : vector<32x128xbf16>, vector<128x128xbf16>, vector<32x128xf32> -> vector<32x128xf32>
    %c0_9 = arith.constant 0 : index
    %c0_10 = arith.constant 0 : index
    %12 = vector.load %arg5[%c0_9, %c0_10] : memref<1x128xf32, #tpu.memory_space<vmem>>, vector<1x128xf32>
    %13 = vector.broadcast %12 : vector<1x128xf32> to vector<32x128xf32>
    %14 = arith.addf %11, %13 : vector<32x128xf32>
    %c0_11 = arith.constant 0 : index
    %c0_12 = arith.constant 0 : index
    %15 = vector.load %arg1[%c0_11, %c0_12] : memref<32x128xf32, #tpu.memory_space<vmem>>, vector<32x128xf32>
    %16 = arith.addf %15, %14 : vector<32x128xf32>
    %c0_13 = arith.constant 0 : index
    %c0_14 = arith.constant 0 : index
    %17 = vector.load %arg6[%c0_13, %c0_14] : memref<32x128xf32, #tpu.memory_space<vmem>>, vector<32x128xf32>
    tpu.vector_store %arg6[%c0_13, %c0_14], %16 {strides = array<i32>} : memref<32x128xf32, #tpu.memory_space<vmem>>, vector<32x128xf32>,
    return
  }
  func.func @transform_0(%arg0: i32) -> (i32, i32) {
    %c0_i32 = arith.constant 0 : i32
    %c0_i32_0 = arith.constant 0 : i32
    return %arg0, %c0_i32 : i32, i32
  }
  func.func @transform_1(%arg0: i32) -> (i32, i32) {
    %c0_i32 = arith.constant 0 : i32
    %c0_i32_0 = arith.constant 0 : i32
    %c0_i32_1 = arith.constant 0 : i32
    return %c0_i32, %c0_i32_0 : i32, i32
  }
  func.func @transform_2(%arg0: i32) -> (i32, i32) {
    %c0_i32 = arith.constant 0 : i32
    %c0_i32_0 = arith.constant 0 : i32
    %c0_i32_1 = arith.constant 0 : i32
    return %c0_i32, %c0_i32_0 : i32, i32
  }
  func.func @transform_3(%arg0: i32) -> (i32, i32) {
    %c0_i32 = arith.constant 0 : i32
    %c0_i32_0 = arith.constant 0 : i32
    %c0_i32_1 = arith.constant 0 : i32
    return %c0_i32, %c0_i32_0 : i32, i32
  }
  func.func @transform_4(%arg0: i32) -> (i32, i32) {
    %c0_i32 = arith.constant 0 : i32
    %c0_i32_0 = arith.constant 0 : i32
    %c0_i32_1 = arith.constant 0 : i32
    return %c0_i32, %c0_i32_0 : i32, i32
  }
  func.func @transform_5(%arg0: i32) -> (i32, i32) {
    %c0_i32 = arith.constant 0 : i32
    %c0_i32_0 = arith.constant 0 : i32
    return %arg0, %c0_i32 : i32, i32
  }
}

module attributes {stable_mosaic.version = 11 : i64} {
  func.func @_residual_mlp_kernel(%arg0: i32, %arg1: memref<32x128xf32, #tpu.memory_space<vmem>>, %arg2: memref<128x128xbf16, #tpu.memory_space<vmem>>, %arg3: memref<1x128xf32, #tpu.memory_space<vmem>>, %arg4: memref<128x128xbf16, #tpu.memory_space<vmem>>, %arg5: memref<1x128xf32, #tpu.memory_space<vmem>>, %arg6: memref<32x128xf32, #tpu.memory_space<vmem>>) attributes {dimension_semantics = [#tpu.dimension_semantics<parallel>], iteration_bounds = array<i64: 1>, scalar_prefetch = 0 : i64, scratch_operands = 0 : i64, tpu.core_type = #tpu.core_type<tc>, window_params = [{transform_indices = @transform_0, window_bounds = array<i64: 32, 128>}, {pipeline_mode = #tpu.pipeline_mode<synchronous>, transform_indices = @transform_1, window_bounds = array<i64: 128, 128>}, {pipeline_mode = #tpu.pipeline_mode<synchronous>, transform_indices = @transform_2, window_bounds = array<i64: 1, 128>}, {pipeline_mode = #tpu.pipeline_mode<synchronous>, transform_indices = @transform_3, window_bounds = array<i64: 128, 128>}, {pipeline_mode = #tpu.pipeline_mode<synchronous>, transform_indices = @transform_4, window_bounds = array<i64: 1, 128>}, {transform_indices = @transform_5, window_bounds = array<i64: 32, 128>}]} {
    %c0 = arith.constant 0 : index
    %c0_0 = arith.constant 0 : index
    %0 = vector.load %arg1[%c0, %c0_0] : memref<32x128xf32, #tpu.memory_space<vmem>>, vector<32x128xf32>
    %1 = arith.truncf %0 : vector<32x128xf32> to vector<32x128xbf16>
    %c0_1 = arith.constant 0 : index
    %c0_2 = arith.constant 0 : index
    %2 = vector.load %arg2[%c0_1, %c0_2] : memref<128x128xbf16, #tpu.memory_space<vmem>>, vector<128x128xbf16>
    %cst = arith.constant dense<0.000000e+00> : vector<32x128xf32>
    %3 = tpu.matmul %1, %2, %cst {dimension_numbers = #tpu.dot_dimension_numbers<[1], [0], [0], [1], [0, 0, 1, 1], [], []>} : vector<32x128xbf16>, vector<128x128xbf16>, vector<32x128xf32> -> vector<32x128xf32>
    %c0_3 = arith.constant 0 : index
    %c0_4 = arith.constant 0 : index
    %4 = vector.load %arg3[%c0_3, %c0_4] : memref<1x128xf32, #tpu.memory_space<vmem>>, vector<1x128xf32>
    %5 = vector.broadcast %4 : vector<1x128xf32> to vector<32x128xf32>
    %6 = arith.addf %3, %5 : vector<32x128xf32>
    %cst_5 = arith.constant 0.000000e+00 : f32
    %7 = vector.broadcast %cst_5 : f32 to vector<32x128xf32>
    %8 = arith.maximumf %6, %7 : vector<32x128xf32>
    %9 = arith.truncf %8 : vector<32x128xf32> to vector<32x128xbf16>
    %c0_6 = arith.constant 0 : index
    %c0_7 = arith.constant 0 : index
    %10 = vector.load %arg4[%c0_6, %c0_7] : memref<128x128xbf16, #tpu.memory_space<vmem>>, vector<128x128xbf16>
    %cst_8 = arith.constant dense<0.000000e+00> : vector<32x128xf32>
    %11 = tpu.matmul %9, %10, %cst_8 {dimension_numbers = #tpu.dot_dimension_numbers<[1], [0], [0], [1], [0, 0, 1, 1], [], []>} : vector<32x128xbf16>, vector<128x128xbf16>, vector<32x128xf32> -> vector<32x128xf32>
    %c0_9 = arith.constant 0 : index
    %c0_10 = arith.constant 0 : index
    %12 = vector.load %arg5[%c0_9, %c0_10] : memref<1x128xf32, #tpu.memory_space<vmem>>, vector<1x128xf32>
    %13 = vector.broadcast %12 : vector<1x128xf32> to vector<32x128xf32>
    %14 = arith.addf %11, %13 : vector<32x128xf32>
    %c0_11 = arith.constant 0 : index
    %c0_12 = arith.constant 0 : index
    %15 = vector.load %arg1[%c0_11, %c0_12] : memref<32x128xf32, #tpu.memory_space<vmem>>, vector<32x128xf32>
    %16 = arith.addf %15, %14 : vector<32x128xf32>
    %c0_13 = arith.constant 0 : index
    %c0_14 = arith.constant 0 : index
    %17 = vector.load %arg6[%c0_13, %c0_14] : memref<32x128xf32, #tpu.memory_space<vmem>>, vector<32x128xf32>
    tpu.vector_store %arg6[%c0_13, %c0_14], %16 {strides = array<i32>} : memref<32x128xf32, #tpu.memory_space<vmem>>, vector<32x128xf32>,
    return
  }
  func.func @transform_0(%arg0: i32) -> (i32, i32) {
    %c0_i32 = arith.constant 0 : i32
    %c0_i32_0 = arith.constant 0 : i32
    return %arg0, %c0_i32 : i32, i32
  }
  func.func @transform_1(%arg0: i32) -> (i32, i32) {
    %c0_i32 = arith.constant 0 : i32
    %c0_i32_0 = arith.constant 0 : i32
    %c0_i32_1 = arith.constant 0 : i32
    return %c0_i32, %c0_i32_0 : i32, i32
  }
  func.func @transform_2(%arg0: i32) -> (i32, i32) {
    %c0_i32 = arith.constant 0 : i32
    %c0_i32_0 = arith.constant 0 : i32
    %c0_i32_1 = arith.constant 0 : i32
    return %c0_i32, %c0_i32_0 : i32, i32
  }
  func.func @transform_3(%arg0: i32) -> (i32, i32) {
    %c0_i32 = arith.constant 0 : i32
    %c0_i32_0 = arith.constant 0 : i32
    %c0_i32_1 = arith.constant 0 : i32
    return %c0_i32, %c0_i32_0 : i32, i32
  }
  func.func @transform_4(%arg0: i32) -> (i32, i32) {
    %c0_i32 = arith.constant 0 : i32
    %c0_i32_0 = arith.constant 0 : i32
    %c0_i32_1 = arith.constant 0 : i32
    return %c0_i32, %c0_i32_0 : i32, i32
  }
  func.func @transform_5(%arg0: i32) -> (i32, i32) {
    %c0_i32 = arith.constant 0 : i32
    %c0_i32_0 = arith.constant 0 : i32
    return %arg0, %c0_i32 : i32, i32
  }
}

</mosaic_0001>

<bundles_post_ra>
// kernel: tpu_custom_call.1
= control target key start
LH: loop header
LB: loop body
LE: loop exit
PB: predicated region body
PF: predicated region fallthrough
CT: control target
= control target key end

     0   :  { %10 = vsyncpa [#allocation3], 0  ;;  %s585_s0 = inlined_call_operand.hbm [shape: f32[32,128], index: 0, kind: input, shape index: {}, may-alias: {0,5}]   ;;  %s586_s1 = inlined_call_operand.vmem [shape: bf16[128,128], index: 1, kind: input, shape index: {}]   ;;  %s587_s2 = inlined_call_operand.vmem [shape: f32[1,128], index: 2, kind: input, shape index: {}]   ;;  %s588_s3 = inlined_call_operand.hbm [shape: bf16[128,128], index: 3, kind: input, shape index: {}]   ;;  %s589_s4 = inlined_call_operand.vmem [shape: f32[1,128], index: 4, kind: input, shape index: {}]   ;;  %s590_s5 = inlined_call_operand.hbm [shape: f32[32,128], index: 5, kind: output, shape index: {}, may-alias: {0,5}]  }
   0x1   :  { %11 = vsyncpa [#allocation6], 0 }
   0x2   :  { %12 = vsyncpa [#allocation4], 0  ;;  %s495_s18 = smov [#allocation2]  }
   0x3   :  { %s18_s19 = sshll.u32 %s495_s18, 4  ;;  %s19_s19 = int_to_ptr.vmem [resolvable:$true] %s18_s19 }
   0x4   :  { %s437_s20 = scalar_lea.vmem %s19_s19, 512  ;;  %p442_p1 = scmp.lt.s32.totalorder %s19_s19, %s19_s19 }
   0x5   :  { %p438_p0 = scmp.ne.s32.totalorder %s19_s19, %s437_s20  ;;  %p443_p2 = scmp.lt.s32.totalorder %s437_s20, %s437_s20 }
   0x7   :  { %p444_p3 = por %p443_p2, %p442_p1 }
   0x9   :  { %p445_p4 = pnand %p444_p3, %p438_p0 }
   0xb   :  { %448 = shalt.err (!%p445_p4)
}
   0xc   :  { %s496_s21 = smov 128   ;;  %s497_s22 = smov 8  }
   0xd   :  { %24 = dma.hbm_to_vmem [thread:$0]  %s585_s0, 512, %s19_s19, [#allocation3], %s496_s21, %s496_s21, %s497_s22  }
   0xe   :  { %s498_s25 = smov [#allocation5]  }
   0xf   :  { %s34_s26 = sshll.u32 %s498_s25, 4  ;;  %s35_s26 = int_to_ptr.vmem [resolvable:$true] %s34_s26 }
  0x10   :  { %s457_s27 = scalar_lea.vmem %s35_s26, 1024  ;;  %p462_p6 = scmp.lt.s32.totalorder %s35_s26, %s35_s26 }
  0x11   :  { %p458_p5 = scmp.ne.s32.totalorder %s35_s26, %s457_s27  ;;  %p463_p7 = scmp.lt.s32.totalorder %s457_s27, %s457_s27 }
  0x13   :  { %p464_p8 = por %p463_p7, %p462_p6 }
  0x15   :  { %p465_p9 = pnand %p464_p8, %p458_p5 }
  0x17   :  { %468 = shalt.err (!%p465_p9)
}
  0x18   :  { %s499_s28 = smov 64   ;;  %s500_s29 = smov 4  }
  0x19   :  { %40 = dma.hbm_to_vmem [thread:$0]  %s588_s3, 1024, %s35_s26, [#allocation6], %s499_s28, %s499_s28, %s500_s29  }
  0x1a   :  { %489 = dma.done.wait [#allocation3], 512  }
  0x1b   :  { %490 = vsyncadd [#allocation3], 4294966784 }
  0x1c   :  { %491 = dma.done.wait [#allocation6], 1024  }
  0x1d   :  { %492 = vsyncadd [#allocation6], 4294966272  ;;  %v413_v0 = vld [vmem:[%s586_s1 + $0x38] sm:$0xff]   ;;  %v414_v1 = vld [vmem:[%s586_s1 + $0x30] sm:$0xff]  }
  0x1e   :  { %366 = vmatprep.subr.bf16.mxu0 %v413_v0  ;;  %v415_v2 = vld [vmem:[%s586_s1 + $0x28] sm:$0xff]   ;;  %v416_v3 = vld [vmem:[%s586_s1 + $0x20] sm:$0xff]   ;;  %v421_v7 = vld [vmem:[#allocation5 + $0x38] sm:$0xff]  }
  0x1f   :  { %367 = vmatpush3.bf16.msra.mxu0 %v413_v0  ;;  %v553_v4 = vld [vmem:[#allocation2] sm:$0xff]  ;;  %v555_v5 = vld [vmem:[#allocation2 + $0x8] sm:$0xff]  ;;  %v422_v8 = vld [vmem:[#allocation5 + $0x30] sm:$0xff]   ;;  %386 = vmatprep.subr.bf16.mxu1 %v421_v7 }
  0x20   :  { %368 = vmatprep.subr.bf16.mxu0 %v414_v1  ;;  %v54_v6 = vpack.c.bf16 %v555_v5, %v553_v4  ;;  %v417_v9 = vld [vmem:[%s586_s1 + $0x18] sm:$0xff]   ;;  %387 = vmatpush3.bf16.msra.mxu1 %v421_v7  ;;  %v423_v10 = vld [vmem:[#allocation5 + $0x28] sm:$0xff]   ;;  %v418_v11 = vld [vmem:[%s586_s1 + $0x10] sm:$0xff]  }
  0x21   :  { %388 = vmatprep.subr.bf16.mxu1 %v422_v8  ;;  %v424_v12 = vld [vmem:[#allocation5 + $0x20] sm:$0xff]   ;;  %v419_v13 = vld [vmem:[%s586_s1 + $0x8] sm:$0xff]   ;;  %v425_v14 = vld [vmem:[#allocation5 + $0x18] sm:$0xff]  }
  0x22   :  { %382 = vmatprep.mubr.bf16.mxu0 %v54_v6  ;;  %v420_v15 = vld [vmem:[%s586_s1] sm:$0xff]   ;;  %v52_v16 = vld [vmem:[#allocation2 + $0x10] sm:$0xff]  ;;  %v53_v17 = vld [vmem:[#allocation2 + $0x18] sm:$0xff] }
  0x23   :  { %369 = vmatpush3.bf16.msra.mxu0 %v414_v1  ;;  %v55_v18 = vpack.c.bf16 %v53_v17, %v52_v16  ;;  %v426_v19 = vld [vmem:[#allocation5 + $0x10] sm:$0xff]   ;;  %v427_v20 = vld [vmem:[#allocation5 + $0x8] sm:$0xff]   ;;  %v428_v21 = vld [vmem:[#allocation5] sm:$0xff]  }
  0x24   :  { %370 = vmatprep.subr.bf16.mxu0 %v415_v2  ;;  %389 = vmatpush3.bf16.msra.mxu1 %v422_v8  ;;  %v328_v24 = vld [vmem:[%s587_s2] ss:$0 sm:$0xff]  ;;  %s501_s2 = smov [#allocation7]  }
  0x25   :  { %390 = vmatprep.subr.bf16.mxu1 %v423_v10  ;;  %v337_v37 = vld [vmem:[%s589_s4] ss:$0 sm:$0xff]  ;;  %s315_s26 = sshll.u32 %s501_s2, 4  ;;  %s316_s26 = int_to_ptr.vmem [resolvable:$true] %s315_s26 }
  0x26   :  { %s469_s4 = scalar_lea.vmem %s316_s26, 512  ;;  %p474_p11 = scmp.lt.s32.totalorder %s316_s26, %s316_s26 }
  0x27   :  { %371 = vmatpush3.bf16.msra.mxu0 %v415_v2  ;;  %p470_p10 = scmp.ne.s32.totalorder %s316_s26, %s469_s4  ;;  %p475_p12 = scmp.lt.s32.totalorder %s469_s4, %s469_s4 }
  0x28   :  { %372 = vmatprep.subr.bf16.mxu0 %v416_v3  ;;  %391 = vmatpush3.bf16.msra.mxu1 %v423_v10 }
  0x29   :  { %392 = vmatprep.subr.bf16.mxu1 %v424_v12  ;;  %p476_p13 = por %p475_p12, %p474_p11 }
  0x2b   :  { %373 = vmatpush3.bf16.msra.mxu0 %v416_v3  ;;  %p477_p0 = pnand %p476_p13, %p470_p10 }
  0x2c   :  { %374 = vmatprep.subr.bf16.mxu0 %v417_v9  ;;  %393 = vmatpush3.bf16.msra.mxu1 %v424_v12 }
  0x2d   :  { %394 = vmatprep.subr.bf16.mxu1 %v425_v14 }
  0x2f   :  { %375 = vmatpush3.bf16.msra.mxu0 %v417_v9 }
  0x30   :  { %376 = vmatprep.subr.bf16.mxu0 %v418_v11  ;;  %395 = vmatpush3.bf16.msra.mxu1 %v425_v14 }
  0x31   :  { %396 = vmatprep.subr.bf16.mxu1 %v426_v19 }
  0x33   :  { %377 = vmatpush3.bf16.msra.mxu0 %v418_v11 }
  0x34   :  { %378 = vmatprep.subr.bf16.mxu0 %v419_v13  ;;  %397 = vmatpush3.bf16.msra.mxu1 %v426_v19 }
  0x35   :  { %398 = vmatprep.subr.bf16.mxu1 %v427_v20 }
  0x37   :  { %379 = vmatpush3.bf16.msra.mxu0 %v419_v13 }
  0x38   :  { %380 = vmatprep.subr.bf16.mxu0 %v420_v15  ;;  %399 = vmatpush3.bf16.msra.mxu1 %v427_v20 }
  0x39   :  { %400 = vmatprep.subr.bf16.mxu1 %v428_v21 }
  0x3b   :  { %381 = vmatpush3.bf16.msra.mxu0 %v420_v15 }
  0x3c   :  { %401 = vmatpush3.bf16.msra.mxu1 %v428_v21 }
  0x3e   :  { %383 = vmatmul.mubr.bf16.vlgmr.msra.gmra.mxu0 %v55_v18 }
  0xfe   :  { %v384_v22 = vpop.f32.mrf.mxu0 }
  0xff   :  { %v170_v28 = vadd.f32 %v384_v22, %v328_v24 }
 0x100   :  { %v161_v23 = vpop.f32.mrf.mxu0 }
 0x101   :  { %v162_v26 = vadd.f32 %v328_v24, %v161_v23  ;;  %v178_v34 = vmax.f32 %v170_v28, 0.0 }
 0x102   :  { %v385_v25 = vpop.f32.mrf.mxu0 }
 0x103   :  { %v173_v27 = vadd.f32 %v385_v25, %v328_v24  ;;  %v176_v32 = vmax.f32 %v162_v26, 0.0 }
 0x104   :  { %v164_v29 = vpop.f32.mrf.mxu0 }
 0x105   :  { %v165_v30 = vadd.f32 %v328_v24, %v164_v29  ;;  %v179_v31 = vmax.f32 %v173_v27, 0.0 }
 0x107   :  { %v177_v33 = vmax.f32 %v165_v30, 0.0  ;;  %v181_v36 = vpack.c.bf16 %v179_v31, %v178_v34 }
 0x109   :  { %v180_v35 = vpack.c.bf16 %v177_v33, %v176_v32 }
 0x10b   :  { %402 = vmatprep.mubr.bf16.mxu1 %v180_v35 }
 0x10c   :  { %403 = vmatmul.mubr.bf16.vlgmr.msra.gmra.mxu1 %v181_v36 }
 0x1cc   :  { %v404_v38 = vpop.f32.mrf.mxu1 }
 0x1cd   :  { %v296_v39 = vadd.f32 %v404_v38, %v337_v37 }
 0x1ce   :  { %v287_v40 = vpop.f32.mrf.mxu1 }
 0x1cf   :  { %v304_v41 = vadd.f32 %v296_v39, %v52_v16  ;;  %v288_v42 = vadd.f32 %v337_v37, %v287_v40 }
 0x1d0   :  { %v405_v43 = vpop.f32.mrf.mxu1 }
 0x1d1   :  { %308 = vst [vmem:[#allocation7 + $0x10] sm:$0xff] %v304_v41  ;;  %v302_v44 = vadd.f32 %v288_v42, %v553_v4  ;;  %v299_v45 = vadd.f32 %v405_v43, %v337_v37 }
 0x1d2   :  { %v290_v46 = vpop.f32.mrf.mxu1 }
 0x1d3   :  { %306 = vst [vmem:[#allocation7] sm:$0xff] %v302_v44  ;;  %v305_v47 = vadd.f32 %v299_v45, %v53_v17  ;;  %v291_v48 = vadd.f32 %v337_v37, %v290_v46 }
 0x1d5   :  { %309 = vst [vmem:[#allocation7 + $0x18] sm:$0xff] %v305_v47  ;;  %v303_v49 = vadd.f32 %v291_v48, %v555_v5 }
 0x1d7   :  { %307 = vst [vmem:[#allocation7 + $0x8] sm:$0xff] %v303_v49 }
 0x1d8   :  { %480 = shalt.err (!%p477_p0)
}
 0x1d9   :  { %321 = dma.vmem_to_hbm [thread:$0]  %s316_s26, 512, %s590_s5, [#allocation4], %s496_s21, %s496_s21, %s497_s22  }
 0x1da   :  { %493 = dma.done.wait [#allocation4], 512  }
 0x1db   :  { %494 = vsyncadd [#allocation4], 4294966784 }
 0x1dc   :  { %325 = vsyncpa [#allocation3], 1 }
 0x1dd   :  { %326 = vsyncpa [#allocation6], 1 }
 0x1de   :  { %327 = vsyncpa [#allocation4], 1 }

// kernel: tpu_custom_call.1
= control target key start
LH: loop header
LB: loop body
LE: loop exit
PB: predicated region body
PF: predicated region fallthrough
CT: control target
= control target key end

     0   :  { %10 = vsyncpa [#allocation3], 0  ;;  %s585_s0 = inlined_call_operand.hbm [shape: f32[32,128], index: 0, kind: input, shape index: {}, may-alias: {0,5}]   ;;  %s586_s1 = inlined_call_operand.vmem [shape: bf16[128,128], index: 1, kind: input, shape index: {}]   ;;  %s587_s2 = inlined_call_operand.vmem [shape: f32[1,128], index: 2, kind: input, shape index: {}]   ;;  %s588_s3 = inlined_call_operand.hbm [shape: bf16[128,128], index: 3, kind: input, shape index: {}]   ;;  %s589_s4 = inlined_call_operand.vmem [shape: f32[1,128], index: 4, kind: input, shape index: {}]   ;;  %s590_s5 = inlined_call_operand.hbm [shape: f32[32,128], index: 5, kind: output, shape index: {}, may-alias: {0,5}]  }
   0x1   :  { %11 = vsyncpa [#allocation6], 0 }
   0x2   :  { %12 = vsyncpa [#allocation4], 0  ;;  %s495_s18 = smov [#allocation2]  }
   0x3   :  { %s18_s19 = sshll.u32 %s495_s18, 4  ;;  %s19_s19 = int_to_ptr.vmem [resolvable:$true] %s18_s19 }
   0x4   :  { %s437_s20 = scalar_lea.vmem %s19_s19, 512  ;;  %p442_p1 = scmp.lt.s32.totalorder %s19_s19, %s19_s19 }
   0x5   :  { %p438_p0 = scmp.ne.s32.totalorder %s19_s19, %s437_s20  ;;  %p443_p2 = scmp.lt.s32.totalorder %s437_s20, %s437_s20 }
   0x7   :  { %p444_p3 = por %p443_p2, %p442_p1 }
   0x9   :  { %p445_p4 = pnand %p444_p3, %p438_p0 }
   0xb   :  { %448 = shalt.err (!%p445_p4)
}
   0xc   :  { %s496_s21 = smov 128   ;;  %s497_s22 = smov 8  }
   0xd   :  { %24 = dma.hbm_to_vmem [thread:$0]  %s585_s0, 512, %s19_s19, [#allocation3], %s496_s21, %s496_s21, %s497_s22  }
   0xe   :  { %s498_s25 = smov [#allocation5]  }
   0xf   :  { %s34_s26 = sshll.u32 %s498_s25, 4  ;;  %s35_s26 = int_to_ptr.vmem [resolvable:$true] %s34_s26 }
  0x10   :  { %s457_s27 = scalar_lea.vmem %s35_s26, 1024  ;;  %p462_p6 = scmp.lt.s32.totalorder %s35_s26, %s35_s26 }
  0x11   :  { %p458_p5 = scmp.ne.s32.totalorder %s35_s26, %s457_s27  ;;  %p463_p7 = scmp.lt.s32.totalorder %s457_s27, %s457_s27 }
  0x13   :  { %p464_p8 = por %p463_p7, %p462_p6 }
  0x15   :  { %p465_p9 = pnand %p464_p8, %p458_p5 }
  0x17   :  { %468 = shalt.err (!%p465_p9)
}
  0x18   :  { %s499_s28 = smov 64   ;;  %s500_s29 = smov 4  }
  0x19   :  { %40 = dma.hbm_to_vmem [thread:$0]  %s588_s3, 1024, %s35_s26, [#allocation6], %s499_s28, %s499_s28, %s500_s29  }
  0x1a   :  { %489 = dma.done.wait [#allocation3], 512  }
  0x1b   :  { %490 = vsyncadd [#allocation3], 4294966784 }
  0x1c   :  { %491 = dma.done.wait [#allocation6], 1024  }
  0x1d   :  { %492 = vsyncadd [#allocation6], 4294966272  ;;  %v413_v0 = vld [vmem:[%s586_s1 + $0x38] sm:$0xff]   ;;  %v414_v1 = vld [vmem:[%s586_s1 + $0x30] sm:$0xff]  }
  0x1e   :  { %366 = vmatprep.subr.bf16.mxu0 %v413_v0  ;;  %v415_v2 = vld [vmem:[%s586_s1 + $0x28] sm:$0xff]   ;;  %v416_v3 = vld [vmem:[%s586_s1 + $0x20] sm:$0xff]   ;;  %v421_v7 = vld [vmem:[#allocation5 + $0x38] sm:$0xff]  }
  0x1f   :  { %367 = vmatpush3.bf16.msra.mxu0 %v413_v0  ;;  %v553_v4 = vld [vmem:[#allocation2] sm:$0xff]  ;;  %v555_v5 = vld [vmem:[#allocation2 + $0x8] sm:$0xff]  ;;  %v422_v8 = vld [vmem:[#allocation5 + $0x30] sm:$0xff]   ;;  %386 = vmatprep.subr.bf16.mxu1 %v421_v7 }
  0x20   :  { %368 = vmatprep.subr.bf16.mxu0 %v414_v1  ;;  %v54_v6 = vpack.c.bf16 %v555_v5, %v553_v4  ;;  %v417_v9 = vld [vmem:[%s586_s1 + $0x18] sm:$0xff]   ;;  %387 = vmatpush3.bf16.msra.mxu1 %v421_v7  ;;  %v423_v10 = vld [vmem:[#allocation5 + $0x28] sm:$0xff]   ;;  %v418_v11 = vld [vmem:[%s586_s1 + $0x10] sm:$0xff]  }
  0x21   :  { %388 = vmatprep.subr.bf16.mxu1 %v422_v8  ;;  %v424_v12 = vld [vmem:[#allocation5 + $0x20] sm:$0xff]   ;;  %v419_v13 = vld [vmem:[%s586_s1 + $0x8] sm:$0xff]   ;;  %v425_v14 = vld [vmem:[#allocation5 + $0x18] sm:$0xff]  }
  0x22   :  { %382 = vmatprep.mubr.bf16.mxu0 %v54_v6  ;;  %v420_v15 = vld [vmem:[%s586_s1] sm:$0xff]   ;;  %v52_v16 = vld [vmem:[#allocation2 + $0x10] sm:$0xff]  ;;  %v53_v17 = vld [vmem:[#allocation2 + $0x18] sm:$0xff] }
  0x23   :  { %369 = vmatpush3.bf16.msra.mxu0 %v414_v1  ;;  %v55_v18 = vpack.c.bf16 %v53_v17, %v52_v16  ;;  %v426_v19 = vld [vmem:[#allocation5 + $0x10] sm:$0xff]   ;;  %v427_v20 = vld [vmem:[#allocation5 + $0x8] sm:$0xff]   ;;  %v428_v21 = vld [vmem:[#allocation5] sm:$0xff]  }
  0x24   :  { %370 = vmatprep.subr.bf16.mxu0 %v415_v2  ;;  %389 = vmatpush3.bf16.msra.mxu1 %v422_v8  ;;  %v328_v24 = vld [vmem:[%s587_s2] ss:$0 sm:$0xff]  ;;  %s501_s2 = smov [#allocation7]  }
  0x25   :  { %390 = vmatprep.subr.bf16.mxu1 %v423_v10  ;;  %v337_v37 = vld [vmem:[%s589_s4] ss:$0 sm:$0xff]  ;;  %s315_s26 = sshll.u32 %s501_s2, 4  ;;  %s316_s26 = int_to_ptr.vmem [resolvable:$true] %s315_s26 }
  0x26   :  { %s469_s4 = scalar_lea.vmem %s316_s26, 512  ;;  %p474_p11 = scmp.lt.s32.totalorder %s316_s26, %s316_s26 }
  0x27   :  { %371 = vmatpush3.bf16.msra.mxu0 %v415_v2  ;;  %p470_p10 = scmp.ne.s32.totalorder %s316_s26, %s469_s4  ;;  %p475_p12 = scmp.lt.s32.totalorder %s469_s4, %s469_s4 }
  0x28   :  { %372 = vmatprep.subr.bf16.mxu0 %v416_v3  ;;  %391 = vmatpush3.bf16.msra.mxu1 %v423_v10 }
  0x29   :  { %392 = vmatprep.subr.bf16.mxu1 %v424_v12  ;;  %p476_p13 = por %p475_p12, %p474_p11 }
  0x2b   :  { %373 = vmatpush3.bf16.msra.mxu0 %v416_v3  ;;  %p477_p0 = pnand %p476_p13, %p470_p10 }
  0x2c   :  { %374 = vmatprep.subr.bf16.mxu0 %v417_v9  ;;  %393 = vmatpush3.bf16.msra.mxu1 %v424_v12 }
  0x2d   :  { %394 = vmatprep.subr.bf16.mxu1 %v425_v14 }
  0x2f   :  { %375 = vmatpush3.bf16.msra.mxu0 %v417_v9 }
  0x30   :  { %376 = vmatprep.subr.bf16.mxu0 %v418_v11  ;;  %395 = vmatpush3.bf16.msra.mxu1 %v425_v14 }
  0x31   :  { %396 = vmatprep.subr.bf16.mxu1 %v426_v19 }
  0x33   :  { %377 = vmatpush3.bf16.msra.mxu0 %v418_v11 }
  0x34   :  { %378 = vmatprep.subr.bf16.mxu0 %v419_v13  ;;  %397 = vmatpush3.bf16.msra.mxu1 %v426_v19 }
  0x35   :  { %398 = vmatprep.subr.bf16.mxu1 %v427_v20 }
  0x37   :  { %379 = vmatpush3.bf16.msra.mxu0 %v419_v13 }
  0x38   :  { %380 = vmatprep.subr.bf16.mxu0 %v420_v15  ;;  %399 = vmatpush3.bf16.msra.mxu1 %v427_v20 }
  0x39   :  { %400 = vmatprep.subr.bf16.mxu1 %v428_v21 }
  0x3b   :  { %381 = vmatpush3.bf16.msra.mxu0 %v420_v15 }
  0x3c   :  { %401 = vmatpush3.bf16.msra.mxu1 %v428_v21 }
  0x3e   :  { %383 = vmatmul.mubr.bf16.vlgmr.msra.gmra.mxu0 %v55_v18 }
  0xfe   :  { %v384_v22 = vpop.f32.mrf.mxu0 }
  0xff   :  { %v170_v28 = vadd.f32 %v384_v22, %v328_v24 }
 0x100   :  { %v161_v23 = vpop.f32.mrf.mxu0 }
 0x101   :  { %v162_v26 = vadd.f32 %v328_v24, %v161_v23  ;;  %v178_v34 = vmax.f32 %v170_v28, 0.0 }
 0x102   :  { %v385_v25 = vpop.f32.mrf.mxu0 }
 0x103   :  { %v173_v27 = vadd.f32 %v385_v25, %v328_v24  ;;  %v176_v32 = vmax.f32 %v162_v26, 0.0 }
 0x104   :  { %v164_v29 = vpop.f32.mrf.mxu0 }
 0x105   :  { %v165_v30 = vadd.f32 %v328_v24, %v164_v29  ;;  %v179_v31 = vmax.f32 %v173_v27, 0.0 }
 0x107   :  { %v177_v33 = vmax.f32 %v165_v30, 0.0  ;;  %v181_v36 = vpack.c.bf16 %v179_v31, %v178_v34 }
 0x109   :  { %v180_v35 = vpack.c.bf16 %v177_v33, %v176_v32 }
 0x10b   :  { %402 = vmatprep.mubr.bf16.mxu1 %v180_v35 }
 0x10c   :  { %403 = vmatmul.mubr.bf16.vlgmr.msra.gmra.mxu1 %v181_v36 }
 0x1cc   :  { %v404_v38 = vpop.f32.mrf.mxu1 }
 0x1cd   :  { %v296_v39 = vadd.f32 %v404_v38, %v337_v37 }
 0x1ce   :  { %v287_v40 = vpop.f32.mrf.mxu1 }
 0x1cf   :  { %v304_v41 = vadd.f32 %v296_v39, %v52_v16  ;;  %v288_v42 = vadd.f32 %v337_v37, %v287_v40 }
 0x1d0   :  { %v405_v43 = vpop.f32.mrf.mxu1 }
 0x1d1   :  { %308 = vst [vmem:[#allocation7 + $0x10] sm:$0xff] %v304_v41  ;;  %v302_v44 = vadd.f32 %v288_v42, %v553_v4  ;;  %v299_v45 = vadd.f32 %v405_v43, %v337_v37 }
 0x1d2   :  { %v290_v46 = vpop.f32.mrf.mxu1 }
 0x1d3   :  { %306 = vst [vmem:[#allocation7] sm:$0xff] %v302_v44  ;;  %v305_v47 = vadd.f32 %v299_v45, %v53_v17  ;;  %v291_v48 = vadd.f32 %v337_v37, %v290_v46 }
 0x1d5   :  { %309 = vst [vmem:[#allocation7 + $0x18] sm:$0xff] %v305_v47  ;;  %v303_v49 = vadd.f32 %v291_v48, %v555_v5 }
 0x1d7   :  { %307 = vst [vmem:[#allocation7 + $0x8] sm:$0xff] %v303_v49 }
 0x1d8   :  { %480 = shalt.err (!%p477_p0)
}
 0x1d9   :  { %321 = dma.vmem_to_hbm [thread:$0]  %s316_s26, 512, %s590_s5, [#allocation4], %s496_s21, %s496_s21, %s497_s22  }
 0x1da   :  { %493 = dma.done.wait [#allocation4], 512  }
 0x1db   :  { %494 = vsyncadd [#allocation4], 4294966784 }
 0x1dc   :  { %325 = vsyncpa [#allocation3], 1 }
 0x1dd   :  { %326 = vsyncpa [#allocation6], 1 }
 0x1de   :  { %327 = vsyncpa [#allocation4], 1 }

</bundles_post_ra>
